<compile_context>
chip_gen: v7x
topology: tpu7x:2x2x1
jax: 0.10.0
libtpu: 0.0.40
codegen_flags: <defaults>
</compile_context>

<pallas_src>
import jax
import jax.numpy as jnp
from jax.experimental import pallas as pl
from jax.experimental.pallas import tpu as pltpu

PRED_LEN = 12       # fixed horizon, matches `.repeat(1, 12, 1)`
MAX_TB = 4096       # lane-tile cap: ~1 MiB VMEM per step (double-buffered f32)


def _round_up(x: int, m: int) -> int:
    return ((x + m - 1) // m) * m


def _const_velocity_kernel(tail_ref, out_ref):
    # tail_ref: [2*D, TB]  sublanes = (t=T-2 coords..., t=T-1 coords...),
    #                      lanes    = batch rows (lane-dense)
    # out_ref : [PRED_LEN*D, TB]
    d = tail_ref.shape[0] // 2
    t = tail_ref[...]
    delta = t[d:, :] - t[:d, :]                     # [D, TB] last observed velocity
    out_ref[...] = jnp.tile(delta, (PRED_LEN, 1))   # sublane replicate -> full-width stores


def _pick_batch_tile(B: int) -> int:
    """Lane-axis (batch) tile: multiple of 128, as large as is useful."""
    if B <= 256:
        return _round_up(max(B, 1), 128)
    # Aim for >= 2 grid steps so both v7x TensorCores stream (grid axis is
    # "parallel"); costs only ~0.35us extra per step on single-TC v5e/v6e.
    half = -(-B // 2)
    return min(MAX_TB, _round_up(half, 128))


def constant_velocity_forward(observed: jax.Array) -> jax.Array:
    """observed: [B, T, D] -> y_pred_rel: [B, 12, D] (last velocity repeated)."""
    B, T, D = observed.shape
    assert T >= 2, "need at least two observed timesteps"

    # Only the last two timesteps matter; slice them in the wrapper (cheap XLA
    # slice, HBM traffic drops ~T/2x) and pack (time, coord) onto sublanes,
    # batch onto lanes.
    tail = observed[:, T - 2:, :].reshape(B, 2 * D)          # [B, 2*D]

    TB = _pick_batch_tile(B)
    B_pad = _round_up(B, TB)
    if B_pad != B:
        tail = jnp.pad(tail, ((0, B_pad - B), (0, 0)))       # tiny pad, avoids ragged blocks
    tail_t = tail.T                                          # [2*D, B_pad] lane-dense batch

    num_steps = B_pad // TB
    in_spec = pl.BlockSpec((2 * D, TB), lambda i: (0, i))
    if num_steps >= 4:
        # No compute to hide DMA behind: a third in-flight input buffer hides
        # DMA start latency across the many small steps.
        in_spec = pl.BlockSpec((2 * D, TB), lambda i: (0, i),
                               pipeline_mode=pl.Buffered(3))

    out_t = pl.pallas_call(
        _const_velocity_kernel,
        out_shape=jax.ShapeDtypeStruct((PRED_LEN * D, B_pad), observed.dtype),
        grid=(num_steps,),
        in_specs=[in_spec],
        out_specs=pl.BlockSpec((PRED_LEN * D, TB), lambda i: (0, i)),
        compiler_params=pltpu.CompilerParams(
            dimension_semantics=("parallel",)),
    )(tail_t)

    # [PRED_LEN*D, B_pad] -> [B, PRED_LEN, D]
    return out_t.T[:B].reshape(B, PRED_LEN, D)


def _reference(observed: jnp.ndarray) -> jnp.ndarray:
    obs_rel = observed[:, 1:] - observed[:, :-1]
    deltas = obs_rel[:, -1][:, None, :]
    return jnp.tile(deltas, (1, PRED_LEN, 1))


if __name__ == "__main__":
    key = jax.random.PRNGKey(0)
    k1, k2 = jax.random.split(key)

    # Small shapes consistent with the module: batch=2, obs_len=8, coords=2.
    B, T, D = 2, 8, 2
    observed = jax.random.normal(k1, (B, T, D), dtype=jnp.float32)
    y_pred = jax.block_until_ready(constant_velocity_forward(observed))
    y_ref = _reference(observed)
    assert y_pred.shape == (B, PRED_LEN, D), y_pred.shape
    assert jnp.allclose(y_pred, y_ref, atol=1e-6), "mismatch vs reference (small)"

    # Second check: exercises batch padding + multi-step "parallel" grid.
    B2 = 300
    observed2 = jax.random.normal(k2, (B2, T, D), dtype=jnp.float32)
    y_pred2 = jax.block_until_ready(constant_velocity_forward(observed2))
    assert y_pred2.shape == (B2, PRED_LEN, D), y_pred2.shape
    assert jnp.allclose(y_pred2, _reference(observed2), atol=1e-6), \
        "mismatch vs reference (padded / multi-step)"

    print("KERNEL_OK")
</pallas_src>

<mosaic_0001>
module attributes {stable_mosaic.version = 11 : i64} {
  func.func @_const_velocity_kernel(%arg0: i32, %arg1: memref<4x128xf32, #tpu.memory_space<vmem>>, %arg2: memref<24x128xf32, #tpu.memory_space<vmem>>) attributes {dimension_semantics = [#tpu.dimension_semantics<parallel>], iteration_bounds = array<i64: 1>, scalar_prefetch = 0 : i64, scratch_operands = 0 : i64, tpu.core_type = #tpu.core_type<tc>, window_params = [{transform_indices = @transform_0, window_bounds = array<i64: 4, 128>}, {transform_indices = @transform_1, window_bounds = array<i64: 24, 128>}]} {
    %c0 = arith.constant 0 : index
    %c0_0 = arith.constant 0 : index
    %0 = vector.load %arg1[%c0, %c0_0] : memref<4x128xf32, #tpu.memory_space<vmem>>, vector<4x128xf32>
    %1 = vector.extract_strided_slice %0 {offsets = [2, 0], sizes = [2, 128], strides = [1, 1]} : vector<4x128xf32> to vector<2x128xf32>
    %2 = vector.extract_strided_slice %0 {offsets = [0, 0], sizes = [2, 128], strides = [1, 1]} : vector<4x128xf32> to vector<2x128xf32>
    %3 = arith.subf %1, %2 : vector<2x128xf32>
    %4 = tpu.concatenate %3, %3, %3, %3, %3, %3, %3, %3, %3, %3, %3, %3 in 0 : vector<2x128xf32>, vector<2x128xf32>, vector<2x128xf32>, vector<2x128xf32>, vector<2x128xf32>, vector<2x128xf32>, vector<2x128xf32>, vector<2x128xf32>, vector<2x128xf32>, vector<2x128xf32>, vector<2x128xf32>, vector<2x128xf32> -> vector<24x128xf32>
    %c0_1 = arith.constant 0 : index
    %c0_2 = arith.constant 0 : index
    %5 = vector.load %arg2[%c0_1, %c0_2] : memref<24x128xf32, #tpu.memory_space<vmem>>, vector<24x128xf32>
    tpu.vector_store %arg2[%c0_1, %c0_2], %4 {strides = array<i32>} : memref<24x128xf32, #tpu.memory_space<vmem>>, vector<24x128xf32>,
    return
  }
  func.func @transform_0(%arg0: i32) -> (i32, i32) {
    %c0_i32 = arith.constant 0 : i32
    %c0_i32_0 = arith.constant 0 : i32
    return %c0_i32, %arg0 : i32, i32
  }
  func.func @transform_1(%arg0: i32) -> (i32, i32) {
    %c0_i32 = arith.constant 0 : i32
    %c0_i32_0 = arith.constant 0 : i32
    return %c0_i32, %arg0 : i32, i32
  }
}

</mosaic_0001>

<bundles_post_ra>
// kernel: tpu_custom_call.1
= control target key start
LH: loop header
LB: loop body
LE: loop exit
PB: predicated region body
PF: predicated region fallthrough
CT: control target
= control target key end

     0   :  { %6 = vsyncpa [#allocation3], 0  ;;  %s149_s0 = inlined_call_operand.hbm [shape: f32[4,128], index: 0, kind: input, shape index: {}]   ;;  %s150_s1 = inlined_call_operand.hbm [shape: f32[24,128], index: 1, kind: output, shape index: {}]  }
   0x1   :  { %7 = vsyncpa [#allocation4], 0  ;;  %s111_s6 = smov [#allocation2]   ;;  %s63_s10 = scalar_lea.hbm %s149_s0, 64 }
   0x2   :  { %s14_s7 = sshll.u32 %s111_s6, 4  ;;  %p64_p0 = scmp.ne.s32.totalorder %s149_s0, %s63_s10  ;;  %s15_s7 = int_to_ptr.vmem [resolvable:$true] %s14_s7 }
   0x3   :  { %p67_p1 = scmp.lt.u32.totalorder %s63_s10, %s149_s0 }
   0x5   :  { %p69_p2 = pnand %p67_p1, %p64_p0 }
   0x7   :  { %72 = shalt.err (!%p69_p2)
}
   0x8   :  { %s73_s15 = scalar_lea.vmem %s15_s7, 64  ;;  %p78_p4 = scmp.lt.s32.totalorder %s15_s7, %s15_s7 }
   0x9   :  { %p74_p3 = scmp.ne.s32.totalorder %s15_s7, %s73_s15  ;;  %p79_p5 = scmp.lt.s32.totalorder %s73_s15, %s73_s15 }
   0xb   :  { %p80_p6 = por %p79_p5, %p78_p4 }
   0xd   :  { %p81_p7 = pnand %p80_p6, %p74_p3 }
   0xf   :  { %84 = shalt.err (!%p81_p7)
}
  0x10   :  { %17 = dma.hbm_to_vmem [thread:$0]  %s149_s0, 64, %s15_s7, [#allocation3]  }
  0x11   :  { %107 = dma.done.wait [#allocation3], 64  }
  0x12   :  { %108 = vsyncadd [#allocation3], 4294967232  ;;  %v21_v0 = vld [vmem:[#allocation2] sm:$0xf]  ;;  %vm33_vm0 = vcmask 1041408   ;;  %vm35_vm1 = vcmask 1043456  }
  0x13   :  { %v23_v1 = vrot.slane %v21_v0, 6  ;;  %s112_s18 = smov [#allocation5]   ;;  %vm37_vm2 = vcmask 1045504  }
  0x14   :  { %s47_s19 = sshll.u32 %s112_s18, 4  ;;  %s48_s19 = int_to_ptr.vmem [resolvable:$true] %s47_s19 }
  0x15   :  { %v25_v2 = vsub.f32 %v21_v0, %v23_v1  ;;  %s85_s0 = scalar_lea.vmem %s48_s19, 384  ;;  %p90_p9 = scmp.lt.s32.totalorder %s48_s19, %s48_s19 }
  0x16   :  { %p86_p8 = scmp.ne.s32.totalorder %s48_s19, %s85_s0  ;;  %p91_p10 = scmp.lt.s32.totalorder %s85_s0, %s85_s0 }
  0x17   :  { %v27_v3 = vrot.slane %v25_v2, 2  ;;  %v29_v4 = vrot.slane %v25_v2, 6  ;;  %v31_v5 = vrot.slane %v25_v2, 4 }
  0x18   :  { %p92_p11 = por %p91_p10, %p90_p9 }
  0x19   :  { %v34_v6 = vsel %vm33_vm0, %v27_v3, %v25_v2 }
  0x1a   :  { %v36_v7 = vsel %vm35_vm1, %v34_v6, %v29_v4  ;;  %p93_p12 = pnand %p92_p11, %p86_p8 }
  0x1b   :  { %v38_v8 = vsel %vm37_vm2, %v36_v7, %v31_v5 }
  0x1c   :  { %39 = vst [vmem:[#allocation5] sm:$0xff] %v38_v8  ;;  %40 = vst [vmem:[#allocation5 + $0x8] sm:$0xff] %v38_v8 }
  0x1d   :  { %41 = vst [vmem:[#allocation5 + $0x10] sm:$0xff] %v38_v8 }
  0x1e   :  { %96 = shalt.err (!%p93_p12)
}
  0x1f   :  { %s97_s22 = scalar_lea.hbm %s150_s1, 384 }
  0x20   :  { %p98_p13 = scmp.ne.s32.totalorder %s150_s1, %s97_s22  ;;  %p101_p0 = scmp.lt.u32.totalorder %s97_s22, %s150_s1 }
  0x22   :  { %p103_p1 = pnand %p101_p0, %p98_p13 }
  0x24   :  { %106 = shalt.err (!%p103_p1)
}
  0x25   :  { %s113_s27 = smov 128   ;;  %s114_s28 = smov 8  }
  0x26   :  { %53 = dma.vmem_to_hbm [thread:$0]  %s48_s19, 384, %s150_s1, [#allocation4], %s113_s27, %s113_s27, %s114_s28  }
  0x27   :  { %109 = dma.done.wait [#allocation4], 384  }
  0x28   :  { %110 = vsyncadd [#allocation4], 4294966912 }
  0x29   :  { %57 = vsyncpa [#allocation3], 1 }
  0x2a   :  { %58 = vsyncpa [#allocation4], 1 }

</bundles_post_ra>
